<compile_context>
chip_gen: v5e
topology: v5e:2x2
jax: 0.10.0
libtpu: 0.0.40
codegen_flags: <defaults>
</compile_context>

<pallas_src>
import functools

import jax
import jax.numpy as jnp
from jax import lax
from jax.experimental import pallas as pl
from jax.experimental.pallas import tpu as pltpu


def _head_kernel(x_ref, w_ref, *rest, head_size, scale, dropout_p):
    # One grid step == one batch element; all tiles fully resident in VMEM.
    if dropout_p > 0.0:
        bits_ref, o_ref = rest
    else:
        (o_ref,) = rest

    H = head_size
    x = x_ref[0]        # (T, C)  bf16
    w = w_ref[...]      # (C, 3H) bf16

    # Fused QKV projection: one MXU matmul, f32 accumulate.
    kqv = jnp.dot(x, w, preferred_element_type=jnp.float32)   # (T, 3H) f32
    k = kqv[:, :H]
    q = kqv[:, H:2 * H] * jnp.float32(scale)                   # fold C**-0.5 into q
    v = kqv[:, 2 * H:]

    # Scores: contract the last dims of q and k (q @ k^T without an XLU transpose).
    s = lax.dot_general(
        q.astype(jnp.bfloat16), k.astype(jnp.bfloat16),
        dimension_numbers=(((1,), (1,)), ((), ())),
        preferred_element_type=jnp.float32)                    # (T, T) f32

    T = s.shape[0]
    row = lax.broadcasted_iota(jnp.int32, (T, T), 0)
    col = lax.broadcasted_iota(jnp.int32, (T, T), 1)
    s = jnp.where(col <= row, s, -jnp.inf)                     # causal mask

    # Online-safe softmax numerator (every row has its diagonal unmasked).
    m = jnp.max(s, axis=-1, keepdims=True)                     # (T, 1)
    e = jnp.exp(s - m)                                         # (T, T), in (0, 1]
    denom = jnp.sum(e, axis=-1, keepdims=True)                 # (T, 1)

    if dropout_p > 0.0:
        # Inverted dropout on the attention weights: keep iff bits >= p * 2^32.
        # (Applied to the unnormalized weights; identical to dropout-after-softmax
        # because the row-wise 1/denom scale commutes with the elementwise mask.)
        thresh = min(int(round(dropout_p * 4294967296.0)), 4294967295)
        keep = bits_ref[0] >= jnp.uint32(thresh)
        e = jnp.where(keep, e * jnp.float32(1.0 / (1.0 - dropout_p)), 0.0)

    # Attention output with bf16 MXU operands, f32 accumulate; then the deferred
    # softmax normalization on the (T, H) result instead of the (T, T) scores.
    out = jnp.dot(e.astype(jnp.bfloat16), v.astype(jnp.bfloat16),
                  preferred_element_type=jnp.float32)          # (T, H) f32
    out = out * (1.0 / denom)
    o_ref[0] = out.astype(o_ref.dtype)


def head_with_dropout(x, wk, wq, wv, *, dropout_p, key=None):
    """x: (B, T, C) f32; wk/wq/wv: (C, H) f32 (already transposed W^T). Returns (B, T, H)."""
    B, T, C = x.shape
    H = wk.shape[1]
    scale = float(C) ** -0.5
    dropout_p = float(dropout_p)
    use_dropout = dropout_p > 0.0

    # Fuse the three projection weights into one (C, 3H) matrix; bf16 operands halve
    # HBM traffic and hit the bf16-native MXU path (f32 accumulation in-kernel).
    w_fused = jnp.concatenate([wk, wq, wv], axis=1).astype(jnp.bfloat16)   # (C, 3H)
    x_bf = x.astype(jnp.bfloat16)

    in_specs = [
        pl.BlockSpec((1, T, C), lambda b: (b, 0, 0)),
        pl.BlockSpec((C, 3 * H), lambda b: (0, 0)),
    ]
    args = [x_bf, w_fused]

    if use_dropout:
        if key is None:
            key = jax.random.PRNGKey(0)
        # Host-side uniform bits; the kernel only does one uint32 compare per element.
        bits = jax.random.bits(key, (B, T, T), dtype=jnp.uint32)
        in_specs.append(pl.BlockSpec((1, T, T), lambda b: (b, 0, 0)))
        args.append(bits)

    kernel = functools.partial(
        _head_kernel, head_size=H, scale=scale,
        dropout_p=dropout_p if use_dropout else 0.0)

    return pl.pallas_call(
        kernel,
        out_shape=jax.ShapeDtypeStruct((B, T, H), x.dtype),
        grid=(B,),
        in_specs=in_specs,
        out_specs=pl.BlockSpec((1, T, H), lambda b: (b, 0, 0)),
        compiler_params=pltpu.CompilerParams(
            dimension_semantics=("parallel",)),   # batch elems independent -> v7x 2-TC shard
    )(*args)


def _reference_no_dropout(x, wk, wq, wv):
    """Pure-JAX (f32) reference of the PyTorch forward with dropout disabled."""
    B, T, C = x.shape
    k = x @ wk
    q = x @ wq
    v = x @ wv
    wei = jnp.einsum("bth,bsh->bts", q, k) * (float(C) ** -0.5)
    mask = jnp.tril(jnp.ones((T, T), dtype=bool))
    wei = jnp.where(mask[None], wei, -jnp.inf)
    wei = jax.nn.softmax(wei, axis=-1)
    return jnp.einsum("bts,bsh->bth", wei, v)


if __name__ == "__main__":
    # Small shapes consistent with the module: B=2, T=block_size=8, C=n_embed=32, head_size=16
    B, T, C, H = 2, 8, 32, 16
    dropout = 0.1

    key = jax.random.PRNGKey(0)
    kx, kk, kq, kv, kd = jax.random.split(key, 5)
    x = jax.random.normal(kx, (B, T, C), dtype=jnp.float32)

    # nn.Linear default init: U(-1/sqrt(in_features), 1/sqrt(in_features)); stored as (C, H) = W^T
    bound = 1.0 / (C ** 0.5)
    wk = jax.random.uniform(kk, (C, H), jnp.float32, -bound, bound)
    wq = jax.random.uniform(kq, (C, H), jnp.float32, -bound, bound)
    wv = jax.random.uniform(kv, (C, H), jnp.float32, -bound, bound)

    # Correctness check of the hot path with dropout disabled (identity).
    # Tolerance accounts for bf16 MXU operands (f32 accumulation).
    out_nodrop = head_with_dropout(x, wk, wq, wv, dropout_p=0.0)
    ref = _reference_no_dropout(x, wk, wq, wv)
    assert jnp.allclose(out_nodrop, ref, atol=3e-2, rtol=3e-2), "mismatch vs reference"

    # Run with dropout active (training-mode inverted-dropout semantics).
    out = head_with_dropout(x, wk, wq, wv, dropout_p=dropout, key=kd)
    jax.block_until_ready(out)
    assert out.shape == (B, T, H)
    print("KERNEL_OK")
</pallas_src>

<mosaic_0001>
module attributes {stable_mosaic.version = 11 : i64} {
  func.func @_head_kernel(%arg0: i32, %arg1: memref<1x8x32xbf16, #tpu.memory_space<vmem>>, %arg2: memref<32x48xbf16, #tpu.memory_space<vmem>>, %arg3: memref<1x8x16xf32, #tpu.memory_space<vmem>>) attributes {dimension_semantics = [#tpu.dimension_semantics<parallel>], iteration_bounds = array<i64: 2>, scalar_prefetch = 0 : i64, scratch_operands = 0 : i64, tpu.core_type = #tpu.core_type<tc>, window_params = [{transform_indices = @transform_0, window_bounds = array<i64: 1, 8, 32>}, {pipeline_mode = #tpu.pipeline_mode<synchronous>, transform_indices = @transform_1, window_bounds = array<i64: 32, 48>}, {transform_indices = @transform_2, window_bounds = array<i64: 1, 8, 16>}]} {
    %c0 = arith.constant 0 : index
    %c0_0 = arith.constant 0 : index
    %c0_1 = arith.constant 0 : index
    %0 = vector.load %arg1[%c0, %c0_0, %c0_1] : memref<1x8x32xbf16, #tpu.memory_space<vmem>>, vector<1x8x32xbf16>
    %1 = vector.shape_cast %0 : vector<1x8x32xbf16> to vector<8x32xbf16>
    %c0_2 = arith.constant 0 : index
    %c0_3 = arith.constant 0 : index
    %2 = vector.load %arg2[%c0_2, %c0_3] : memref<32x48xbf16, #tpu.memory_space<vmem>>, vector<32x48xbf16>
    %cst = arith.constant dense<0.000000e+00> : vector<8x48xf32>
    %3 = tpu.matmul %1, %2, %cst {dimension_numbers = #tpu.dot_dimension_numbers<[1], [0], [0], [1], [0, 0, 1, 1], [], []>} : vector<8x32xbf16>, vector<32x48xbf16>, vector<8x48xf32> -> vector<8x48xf32>
    %4 = vector.extract_strided_slice %3 {offsets = [0, 0], sizes = [8, 16], strides = [1, 1]} : vector<8x48xf32> to vector<8x16xf32>
    %5 = vector.extract_strided_slice %3 {offsets = [0, 16], sizes = [8, 16], strides = [1, 1]} : vector<8x48xf32> to vector<8x16xf32>
    %cst_4 = arith.constant 0.176776692 : f32
    %6 = vector.broadcast %cst_4 : f32 to vector<8x16xf32>
    %7 = arith.mulf %5, %6 : vector<8x16xf32>
    %8 = vector.extract_strided_slice %3 {offsets = [0, 32], sizes = [8, 16], strides = [1, 1]} : vector<8x48xf32> to vector<8x16xf32>
    %9 = arith.truncf %7 : vector<8x16xf32> to vector<8x16xbf16>
    %10 = arith.truncf %4 : vector<8x16xf32> to vector<8x16xbf16>
    %cst_5 = arith.constant dense<0.000000e+00> : vector<8x8xf32>
    %11 = tpu.matmul %9, %10, %cst_5 {dimension_numbers = #tpu.dot_dimension_numbers<[1], [1], [0], [0], [0, 0, 1, 0], [], []>} : vector<8x16xbf16>, vector<8x16xbf16>, vector<8x8xf32> -> vector<8x8xf32>
    %12 = tpu.iota {dimensions = array<i32: 0>} : vector<8x8xi32>
    %13 = tpu.iota {dimensions = array<i32: 1>} : vector<8x8xi32>
    %14 = arith.cmpi sle, %13, %12 : vector<8x8xi32>
    %cst_6 = arith.constant 0xFF800000 : f32
    %15 = vector.broadcast %cst_6 : f32 to vector<8x8xf32>
    %16 = arith.select %14, %11, %15 : vector<8x8xi1>, vector<8x8xf32>
    %cst_7 = arith.constant dense<0xFF800000> : vector<8xf32>
    %17 = vector.multi_reduction <maximumf>, %16, %cst_7 [1] : vector<8x8xf32> to vector<8xf32>
    %18 = vector.shape_cast %17 : vector<8xf32> to vector<8x1xf32>
    %19 = vector.broadcast %18 : vector<8x1xf32> to vector<8x8xf32>
    %20 = arith.subf %16, %19 : vector<8x8xf32>
    %21 = math.exp %20 : vector<8x8xf32>
    %cst_8 = arith.constant dense<0.000000e+00> : vector<8xf32>
    %22 = vector.multi_reduction <add>, %21, %cst_8 [1] : vector<8x8xf32> to vector<8xf32>
    %23 = vector.shape_cast %22 : vector<8xf32> to vector<8x1xf32>
    %24 = arith.truncf %21 : vector<8x8xf32> to vector<8x8xbf16>
    %25 = arith.truncf %8 : vector<8x16xf32> to vector<8x16xbf16>
    %cst_9 = arith.constant dense<0.000000e+00> : vector<8x16xf32>
    %26 = tpu.matmul %24, %25, %cst_9 {dimension_numbers = #tpu.dot_dimension_numbers<[1], [0], [0], [1], [0, 0, 1, 1], [], []>} : vector<8x8xbf16>, vector<8x16xbf16>, vector<8x16xf32> -> vector<8x16xf32>
    %cst_10 = arith.constant 1.000000e+00 : f32
    %27 = vector.broadcast %cst_10 : f32 to vector<8x1xf32>
    %28 = arith.divf %27, %23 : vector<8x1xf32>
    %29 = vector.broadcast %28 : vector<8x1xf32> to vector<8x16xf32>
    %30 = arith.mulf %26, %29 : vector<8x16xf32>
    %c0_11 = arith.constant 0 : index
    %c0_12 = arith.constant 0 : index
    %c0_13 = arith.constant 0 : index
    %31 = vector.load %arg3[%c0_11, %c0_12, %c0_13] : memref<1x8x16xf32, #tpu.memory_space<vmem>>, vector<1x8x16xf32>
    %32 = vector.shape_cast %31 : vector<1x8x16xf32> to vector<8x16xf32>
    %33 = vector.shape_cast %30 : vector<8x16xf32> to vector<1x8x16xf32>
    tpu.vector_store %arg3[%c0_11, %c0_12, %c0_13], %33 {strides = array<i32>} : memref<1x8x16xf32, #tpu.memory_space<vmem>>, vector<1x8x16xf32>,
    return
  }
  func.func @transform_0(%arg0: i32) -> (i32, i32, i32) {
    %c0_i32 = arith.constant 0 : i32
    %c0_i32_0 = arith.constant 0 : i32
    %c0_i32_1 = arith.constant 0 : i32
    return %arg0, %c0_i32, %c0_i32_0 : i32, i32, i32
  }
  func.func @transform_1(%arg0: i32) -> (i32, i32) {
    %c0_i32 = arith.constant 0 : i32
    %c0_i32_0 = arith.constant 0 : i32
    %c0_i32_1 = arith.constant 0 : i32
    return %c0_i32, %c0_i32_0 : i32, i32
  }
  func.func @transform_2(%arg0: i32) -> (i32, i32, i32) {
    %c0_i32 = arith.constant 0 : i32
    %c0_i32_0 = arith.constant 0 : i32
    %c0_i32_1 = arith.constant 0 : i32
    return %arg0, %c0_i32, %c0_i32_0 : i32, i32, i32
  }
}

</mosaic_0001>

<bundles_post_ra>
// kernel: tpu_custom_call.1
= control target key start
LH: loop header
LB: loop body
LE: loop exit
PB: predicated region body
PF: predicated region fallthrough
CT: control target
= control target key end

     0   :  { %7 = vsyncpa [#allocation3], 0  ;;  %s776_s0 = inlined_call_operand.hbm [shape: bf16[2,8,32], index: 0, kind: input, shape index: {}]   ;;  %s777_s1 = inlined_call_operand.hbm [shape: bf16[32,48], index: 1, kind: input, shape index: {}]   ;;  %s778_s2 = inlined_call_operand.hbm [shape: f32[2,8,16], index: 2, kind: output, shape index: {}]  }
   0x1   :  { %9 = vsyncpa [#allocation3 + $0x1], 0 }
   0x2   :  { %10 = vsyncpa [#allocation6], 0 }
   0x3   :  { %11 = vsyncpa [#allocation4], 0 }
   0x4   :  { %13 = vsyncpa [#allocation4 + $0x1], 0  ;;  %s636_s9 = smov 0   ;;  %s638_s10 = smov 0  }
   0x5   :  { %s640_s11 = smov 0   ;;  %s642_s12 = smov 0  }
   0x6 LB: > { %s108_s15 = sshll.u32 %s777_s1, 4  ;;  %s660_s16 = sadd.s32 4294967295, %s614_s12   ;;  %s614_s12 = sphi %s642_s12, %s788_s12   ;;  %s610_s11 = sphi %s640_s11, %s787_s11   ;;  %s606_s10 = sphi %s638_s10, %s786_s10   ;;  %s602_s9 = sphi %s636_s9, %s785_s9   ;;  %s109_s15 = int_to_ptr.hbm [resolvable:$true] %s108_s15 }
   0x7   : > { %p393_p0 = scmp.ge.s32.totalorder %s614_s12, 1  ;;  %p40_p1 = scmp.eq.s32.totalorder %s660_s16, 0 }
   0x8   : > { %p97_p2 = scmp.lt.s32.totalorder %s614_s12, 3  ;;  %s616_s18 = smov [#allocation5]  }
   0x9   : > { %s110_s19 = sshll.u32 %s616_s18, 4  ;;  %s617_s20 = smov 64   ;;  %s111_s19 = int_to_ptr.vmem [resolvable:$true] %s110_s19 }
   0xa   : > { %p665_p3 = pnand %p393_p0, %p97_p2  ;;  %s618_s21 = smov 4  }
   0xb   : > { %s392_s22 = sadd.s32 4294967294, %s614_s12   ;;  %s676_s23 = sadd.s32 1, %s614_s12  }
   0xc   : > { %p427_p4 = pneg %p665_p3  ;;  %s26_s24 = sadd.s32 1, %s610_s11 }
   0xd   : > { %s23_s25 = ssub.s32 %s614_s12, %s676_s23  ;;  %p33_p7 = scmp.ne.s32.totalorder %s610_s11, %s606_s10 }
   0xe   : > { %p428_p6 = pnand %p427_p4, %p40_p1  ;;  %p24_p8 = scmp.eq.s32.totalorder %s23_s25, 0 }
   0xf   : > { %p34_p9 = scmp.eq.s32.totalorder %s614_s12, 0  ;;  %p39_p10 = scmp.ne.s32.totalorder %s606_s10, %s602_s9 }
  0x10   : > { %430 = dma.hbm_to_vmem [thread:$0]  (!%p428_p6), %s109_s15, 256, %s111_s19, [#allocation6], %s617_s20, %s617_s20, %s618_s21  }
  0x11   : > { %p84_p11 = scmp.eq.s32.totalorder %s660_s16, 1  ;;  %p692_p12 = por %p40_p1, %p39_p10 }
  0x12   : > { %s688_s26 = scalar_select %p24_p8, %s610_s11, %s26_s24  }
  0x13   : > { %p696_p13 = por %p84_p11, %p33_p7  ;;  %p90_p0 = scmp.eq.s32.totalorder %s392_s22, 1 }
  0x14   : > { %p35_p2 = por %p34_p9, %p33_p7  ;;  %s124_s29 = sand.u32 1, %s610_s11  }
  0x15   : > { %p701_p4 = por %p90_p0, %p39_p10  ;;  %p440_p6 = scmp.lt.s32.totalorder %s614_s12, 2 }
  0x16   : > { %s396_s3 = sshll.u32 %s124_s29, 2  ;;  %s397_s4 = sshll.u32 %s614_s12, 2 }
  0x17   : > { %s132_s7 = scalar_lea.hbm %s776_s0, %s397_s4  ;;  %s128_s13 = scalar_lea.vmem [#allocation2], %s396_s3 }
  0x18   : > { %s134_s8 = sshll.u32 %s132_s7, 4  ;;  %s136_s14 = sshll.u32 %s128_s13, 4  ;;  %s135_s8 = int_to_ptr.hbm [resolvable:$true] %s134_s8  ;;  %s137_s14 = int_to_ptr.vmem [resolvable:$true] %s136_s14 }
  0x19   : > { %p710_p8 = pnand %p440_p6, %p35_p2  ;;  %s125_s18 = scalar_lea.sflag [#allocation3], %s124_s29 }
  0x1a   : > { %s514_s19 = sshra.s32 %s135_s8, 4  ;;  %s521_s24 = scalar_lea.hbm %s776_s0, 8  ;;  %s515_s19 = int_to_ptr.hbm [resolvable:$true] %s514_s19 }
  0x1b   : > { %s516_s20 = scalar_lea.hbm %s515_s19, 4  ;;  %p518_p9 = pneg %p710_p8 }
  0x1c   : > { %p517_p7 = scmp.ne.s32.totalorder %s515_s19, %s516_s20  ;;  %p522_p0 = scmp.lt.s32.totalorder %s515_s19, %s776_s0 }
  0x1d   : > { %p523_p2 = scmp.lt.s32.totalorder %s521_s24, %s516_s20 }
  0x1e   : > { %p519_p10 = pnand %p518_p9, %p517_p7 }
  0x1f   : > { %p524_p6 = por %p523_p2, %p522_p0 }
  0x20   : > { %p520_p11 = pneg %p519_p10 }
  0x22   : > { %p525_p5 = pnand %p524_p6, %p520_p11 }
  0x24   : > { %528 = shalt.err (!%p525_p5)
}
  0x25   : > { %434 = dma.hbm_to_vmem [thread:$0]  (!%p710_p8), %s135_s8, 64, %s137_s14, %s125_s18  }
  0x26   : > { %145 = sbr.rel (%p665_p3) target bundleno = 696 (0x2b8), region = 28  ;;  %s727_s29 = sand.u32 (!%p665_p3), 1, %s606_s10  }
  0x27   : > { %s399_s4 = sshll.u32 (!%p665_p3), %s727_s29, 2  ;;  %s148_s5 = scalar_lea.sflag (!%p665_p3), [#allocation3], %s727_s29 }
  0x28   : > { %s151_s6 = scalar_lea.vmem (!%p665_p3), [#allocation2], %s399_s4 }
  0x2b   : > { %589 = dma.done.wait (%p692_p12), %s148_s5, 64  }
  0x2c   : > { %591 = vsyncadd (%p692_p12), %s148_s5, 4294967232 }
  0x2d   : > { %593 = dma.done.wait (%p40_p1), [#allocation6], 256  }
  0x2e   : > { %595 = vsyncadd (%p40_p1), [#allocation6], 4294967040  ;;  %v418_v0 = vld [vmem:[#allocation5 + $0x8] sm:$0xff]  ;;  %v417_v1 = vld [vmem:[#allocation5] sm:$0xff]  ;;  %vm196_vm0 = vcmask 261120   ;;  %vm219_vm1 = vcmask 130048   ;;  %v239_v12 = vlaneseq }
  0x2f   : > { %206 = vmatpush.bf16.msra.mxu0 %v418_v0  ;;  %v179_v2 = vld [vmem:[%s151_s6] sm:$0xf]  ;;  %s619_s17 = smov 96   ;;  %s620_s27 = smov 112   ;;  %vm262_vm2 = vcmask 1043456   ;;  %vm245_vm4 = vcmask 64512  }
  0x30   : > { %v240_v13 = vshrl.u32 %v239_v12, 7  ;;  %v242_v14 = vand.u32 127, %v239_v12  ;;  %s414_s7 = sshll.u32 %s660_s16, 3  ;;  %s401_s8 = sshll.u32 %s727_s29, 3 }
  0x31   : > { %s307_s15 = scalar_lea.hbm %s778_s2, %s414_s7  ;;  %s177_s18 = scalar_lea.vmem [#allocation7], %s401_s8 }
  0x32   : > { %vm243_vm3 = vcmp.le.s32.totalorder %v242_v14, %v240_v13  ;;  %s309_s19 = sshll.u32 %s177_s18, 4  ;;  %s311_s20 = sshll.u32 %s307_s15, 4  ;;  %s310_s19 = int_to_ptr.vmem [resolvable:$true] %s309_s19  ;;  %s312_s20 = int_to_ptr.hbm [resolvable:$true] %s311_s20 }
  0x33   : > { %207 = vmatpush.bf16.msra.mxu0 %v417_v1  ;;  %s297_s16 = scalar_lea.sflag [#allocation4], %s727_s29  ;;  %s558_s21 = sshra.s32 %s312_s20, 4  ;;  %s559_s21 = int_to_ptr.hbm [resolvable:$true] %s558_s21 }
  0x34   : > { %s560_s22 = scalar_lea.hbm %s559_s21, 8  ;;  %s564_s3 = scalar_lea.hbm %s778_s2, 16 }
  0x35   : > { %p561_p1 = scmp.ne.s32.totalorder %s559_s21, %s560_s22  ;;  %p565_p12 = scmp.lt.s32.totalorder %s559_s21, %s778_s2 }
  0x36   : > { %410 = vmatmul.msk.bf16.vlgmr.msra.gmra.mxu0 %vm196_vm0, %v179_v2  ;;  %p566_p8 = scmp.lt.s32.totalorder %s564_s3, %s560_s22 }
  0x37   : > { %p562_p3 = pnand %p561_p1, %p696_p13 }
  0x38   : > { %p567_p7 = por %p566_p8, %p565_p12 }
  0x39   : > { %p563_p5 = pneg %p562_p3 }
  0x3b   : > { %p568_p9 = pnand %p567_p7, %p563_p5 }
  0xb3   : > { %v209_v3 = vpop.f32.mrf.mxu0 }
  0xb4   : > { %v213_v4 = vmul.f32 0.17677669, %v209_v3  ;;  %v215_v5 = vpack.c.bf16 %v209_v3, %v209_v3 }
  0xb6   : > { %257 = vrot.lane.b32.xlu1 %v215_v5, %s619_s17  ;;  %v224_v6 = vsel %vm219_vm1, %v215_v5, 0  ;;  %v214_v7 = vpack.c.bf16 %v213_v4, %v213_v4 }
  0xb7   : > { %233 = vmatpush.bf16.xpose.msra.mxu1 %v224_v6 }
  0xb8   : > { %217 = vrot.lane.b32.xlu0 %v214_v7, %s620_s27 }
  0xbb   : > { %v211_v8 = vpop.f32.mrf.mxu0 }
 0x128   : > { %v258_v9 = vpop.permute.xlu1 %257 }
 0x129   : > { %v264_v10 = vsel %vm262_vm2, %v258_v9, 0 }
 0x12a   : > { %273 = vmatpush.bf16.msra.mxu2 %v264_v10  ;;  %v218_v11 = vpop.permute.xlu0 %217 }
 0x12b   : > { %411 = vmatmul.msk.bf16.vlgmr.msra.gmra.mxu1 %vm219_vm1, %v218_v11 }
 0x1a8   : > { %v235_v15 = vpop.f32.mrf.mxu1 }
 0x1a9   : > { %v244_v16 = vsel %vm243_vm3, %v235_v15, -inf }
 0x1aa   : > { %v246_v17 = vsel %vm245_vm4, %v244_v16, -inf }
 0x1ab   : > { %247 = vmax.xlane.f32.xlu0 %v246_v17 }
 0x1b0   : > { %v237_v18 = vpop.f32.mrf.mxu1 }
 0x21e   : > { %v248_v19 = vpop.xlane.xlu0 %247 }
 0x21f   : > { %v249_v20 = vsub.f32 %v244_v16, %v248_v19 }
 0x221   : > { %v250_v21 = vmul.f32 1.442695, %v249_v20 }
 0x223   : > { %480 = vpow2.f32 %v250_v21 }
 0x229   : > { %v481_v22 = vpop.eup %480 }
 0x22a   : > { %v252_v23 = vsel %vm245_vm4, %v481_v22, 0.0  ;;  %v255_v24 = vpack.c.bf16 %v481_v22, %v481_v22 }
 0x22b   : > { %253 = vadd.xlane.f32.xlu1 %v252_v23 }
 0x22c   : > { %412 = vmatmul.msk.bf16.vlgmr.msra.gmra.mxu2 %vm245_vm4, %v255_v24 }
 0x29e   : > { %v254_v25 = vpop.xlane.xlu1 %253 }
 0x29f   : > { %482 = vrcp.f32 %v254_v25  ;;  %v290_v29 = vand.u32 2147483648, %v254_v25  ;;  %v288_v31 = vand.u32 2147483647, %v254_v25  ;;  %vm284_vm6 = vweird.f32 %v254_v25 }
 0x2a1   : > { %v291_v33 = vor.u32 1.1754944e-38, %v290_v29  ;;  %vm289_vm8 = vcmp.eq.f32.partialorder %v288_v31, 8.507059e+37 }
 0x2a5   : > { %v483_v26 = vpop.eup %482 }
 0x2a6   : > { %v280_v27 = vmul.f32 %v483_v26, %v254_v25  ;;  %vm285_vm5 = vweird.f32 %v483_v26 }
 0x2a7   : > { %vm286_vm7 = vmor %vm284_vm6, %vm285_vm5 }
 0x2a8   : > { %v281_v28 = vsub.f32 1.0, %v280_v27 }
 0x2aa   : > { %v282_v30 = vmul.f32 %v483_v26, %v281_v28 }
 0x2ac   : > { %v283_v32 = vadd.f32 %v483_v26, %v282_v30 }
 0x2ae   : > { %v287_v34 = vsel %vm286_vm7, %v483_v26, %v283_v32 }
 0x2af   : > { %v275_v35 = vpop.f32.mrf.mxu2  ;;  %v292_v36 = vsel %vm289_vm8, %v291_v33, %v287_v34 }
 0x2b0   : > { %v294_v37 = vmul.f32 %v292_v36, %v275_v35 }
 0x2b2   : > { %295 = vst.msk [vmem:[%s177_s18] sm:$0xff] %vm219_vm1, %v294_v37 }
 0x2b3   : > { %571 = shalt.err (!%p568_p9)
}
 0x2b4   : > { %425 = dma.vmem_to_hbm [thread:$0]  (%p696_p13), %s310_s19, 128, %s312_s20, %s297_s16  }
 0x2b7   : > { %v277_v38 = vpop.f32.mrf.mxu2 }
 0x2b8 PF: > { %s323_s29 = sand.u32 1, %s602_s9   ;;  %p784_p10 = scmp.ge.s32.totalorder %s614_s12, 2 }
 0x2b9   : > { %s324_s6 = scalar_lea.sflag [#allocation4], %s323_s29 }
 0x2ba   : > { %p436_p11 = pnand %p784_p10, %p701_p4 }
 0x2bc   : > { %p437_p0 = pneg %p436_p11 }
 0x2be   : > { %597 = dma.done.wait (%p437_p0), %s324_s6, 128  }
 0x2bf   : > { %599 = vsyncadd (%p437_p0), %s324_s6, 4294967168  ;;  %p16_p2 = scmp.ge.s32.totalorder %s676_s23, 4   ;;  %s785_s9 = smov %s606_s10 }
 0x2c0   : > { %s786_s10 = smov %s610_s11  ;;  %s787_s11 = smov %s688_s26 }
 0x2c1   : > { %s788_s12 = smov %s676_s23  ;;  %18 = sbr.rel (!%p16_p2) target bundleno = 6 (0x6), region = 77 }
 0x2c6   :  { %330 = vsyncpa [#allocation3], 1 }
 0x2c7   :  { %332 = vsyncpa [#allocation3 + $0x1], 1 }
 0x2c8   :  { %333 = vsyncpa [#allocation6], 1 }
 0x2c9   :  { %334 = vsyncpa [#allocation4], 1 }
 0x2ca   :  { %336 = vsyncpa [#allocation4 + $0x1], 1 }

</bundles_post_ra>
